<compile_context>
chip_gen: v7x
topology: tpu7x:2x2x1
jax: 0.10.0
libtpu: 0.0.40
codegen_flags: <defaults>
</compile_context>

<pallas_src>
import functools

import jax
import jax.numpy as jnp
from jax import lax
from jax.experimental import pallas as pl
from jax.experimental.pallas import tpu as pltpu

EPS = 1e-5  # nn.BatchNorm1d default


def _round_up(x, m):
    return (x + m - 1) // m * m


def _conv_tile(x_ref, w_ref, base, *, tl, tle, kernel_size, dilation):
    """One (C_out, TL) f32 pre-bias conv tile.

    x_ref: (1, C_in, L_in)  w_ref: (K, C_out, C_in).  `base` is a multiple of
    128 and `tle` a multiple of 128, so the window load is lane-aligned; the
    per-tap shifts are static in-register slices.
    """
    xw = x_ref[0, :, pl.ds(base, tle)]                       # (C_in, TLE)
    c_out = w_ref.shape[1]
    acc = jnp.zeros((c_out, tl), jnp.float32)
    for k in range(kernel_size):                             # K small & static
        s = k * dilation
        xs = xw[:, s:s + tl]                                 # (C_in, TL) static
        acc = acc + jnp.dot(w_ref[k], xs,                    # MXU-native
                            preferred_element_type=jnp.float32)
    return acc                                               # (C_out, TL) f32


def _stats_kernel(x_ref, w_ref, s_ref, sq_ref, *, tl, tle, kernel_size,
                  dilation, l_valid, nj_per_core):
    # Grid: (core_split, N, L_tiles).  s_ref/sq_ref: (1, C_out, 1) accumulators
    # resident across the (arbitrary) L-tile axis.
    c = pl.program_id(0)
    j = pl.program_id(2)
    t = c * nj_per_core + j
    base = pl.multiple_of(t * tl, 128)

    acc = _conv_tile(x_ref, w_ref, base, tl=tl, tle=tle,
                     kernel_size=kernel_size, dilation=dilation)

    # Mask right-padding columns so BN stats stay exact.  Stats are on the
    # pre-bias activations (the conv bias cancels in train-mode BatchNorm).
    col = base + lax.broadcasted_iota(jnp.int32, (1, tl), 1)
    am = acc * (col < l_valid).astype(jnp.float32)

    @pl.when(j == 0)
    def _init():
        s_ref[...] = jnp.zeros_like(s_ref)
        sq_ref[...] = jnp.zeros_like(sq_ref)

    s_ref[0] += jnp.sum(am, axis=1, keepdims=True)
    sq_ref[0] += jnp.sum(am * am, axis=1, keepdims=True)


def _conv_bn_tanh_kernel(x_ref, w_ref, scale_ref, shift_ref, o_ref, *, tl, tle,
                         kernel_size, dilation):
    # Grid: (N, L_tiles).  Recompute the cheap conv and fuse BN affine + tanh;
    # the (C_out, TL) store is lane-dense.
    j = pl.program_id(1)
    base = pl.multiple_of(j * tl, 128)
    acc = _conv_tile(x_ref, w_ref, base, tl=tl, tle=tle,
                     kernel_size=kernel_size, dilation=dilation)
    o_ref[0] = jnp.tanh(acc * scale_ref[...] + shift_ref[...])


def conv_bn_tanh(x_ncl, w, b, gamma, beta, *, kernel_size=3, dilation=1,
                 padding=True, compute_dtype=jnp.bfloat16):
    """Forward of Conv(in,out): Conv1d -> BatchNorm1d(train) -> Tanh.

    x_ncl: (N, C_in, L)   w: (C_out, C_in, K)   b/gamma/beta: (C_out,)
    Returns (N, C_out, L_out) float32.  `b` is accepted for API fidelity but
    the conv bias cancels exactly inside train-mode BatchNorm.
    """
    del b  # cancels: gamma * ((acc + b) - (mean_acc + b)) * inv + beta
    N, C_in, L = x_ncl.shape
    C_out = w.shape[0]
    K = kernel_size
    assert w.shape == (C_out, C_in, K)
    p = (K - 1) // 2 if padding else 0
    halo = dilation * (K - 1)
    L_out = L + 2 * p - halo
    assert L_out > 0

    # ---- L tiling: lane-dense tiles, adaptive up to 2048 lanes, capped so the
    # f32 accumulator / output tile stays comfortably inside the vreg file.
    c_out_pad = _round_up(C_out, 8)
    TL = min(2048, 128 * pl.cdiv(L_out, 128))
    while TL > 128 and c_out_pad * TL * 4 > 128 * 1024:
        TL = max(128, (TL // 2) // 128 * 128)
    NJ = pl.cdiv(L_out, TL)

    # Core-split of the L-tile reduction (pass 1 only) so both v7x TensorCores
    # get work even when N is small/odd.
    NC = 2 if NJ >= 2 else 1
    NJ1 = pl.cdiv(NJ, NC)
    NJ_pad = NJ1 * NC

    TLE = TL + _round_up(halo, 128) if halo else TL   # aligned halo window
    L_in = _round_up((NJ_pad - 1) * TL + TLE, 128)    # padded input length

    # Keep the (N, C_in, L) layout; only zero-pad: `p` on the left, zeros to
    # L_in on the right.  Cast inputs to the compute dtype (bf16 by default).
    x_pad = jnp.pad(x_ncl.astype(compute_dtype),
                    ((0, 0), (0, 0), (p, L_in - p - L)))
    w_t = jnp.transpose(w, (2, 0, 1)).astype(compute_dtype)   # (K, C_out, C_in)

    # TODO(synk): for very long sequences, halo-tile x along L (Element-indexed
    # BlockSpec or a manual make_async_copy from an ANY-space x) instead of
    # holding the full (C_in, L_in) slab per batch element in VMEM.
    vmem_limit = 32 * 1024 * 1024  # explicit; >= defaults, safe on v7x's 64 MiB

    # ---- Pass 1: partial BN statistics only (no pre-activation intermediate).
    stats_kernel = functools.partial(
        _stats_kernel, tl=TL, tle=TLE, kernel_size=K, dilation=dilation,
        l_valid=L_out, nj_per_core=NJ1)
    s, sq = pl.pallas_call(
        stats_kernel,
        grid=(NC, N, NJ1),
        in_specs=[
            pl.BlockSpec((1, C_in, L_in), lambda c, n, j: (n, 0, 0)),
            pl.BlockSpec((K, C_out, C_in), lambda c, n, j: (0, 0, 0)),
        ],
        out_specs=(
            pl.BlockSpec((1, C_out, 1), lambda c, n, j: (c * N + n, 0, 0)),
            pl.BlockSpec((1, C_out, 1), lambda c, n, j: (c * N + n, 0, 0)),
        ),
        out_shape=(
            jax.ShapeDtypeStruct((NC * N, C_out, 1), jnp.float32),
            jax.ShapeDtypeStruct((NC * N, C_out, 1), jnp.float32),
        ),
        compiler_params=pltpu.CompilerParams(
            dimension_semantics=("parallel", "parallel", "arbitrary"),
            vmem_limit_bytes=vmem_limit),
    )(x_pad, w_t)

    # ---- Tiny JAX finalize: global train-mode BN stats (biased variance).
    cnt = float(N * L_out)
    mean = jnp.sum(s, axis=0) / cnt                          # (C_out, 1)
    var = jnp.maximum(jnp.sum(sq, axis=0) / cnt - mean * mean, 0.0)
    inv = lax.rsqrt(var + EPS)
    scale = gamma.reshape(C_out, 1).astype(jnp.float32) * inv
    shift = beta.reshape(C_out, 1).astype(jnp.float32) - mean * scale

    # ---- Pass 2: recompute conv, fuse BN affine + tanh, write output once.
    fused_kernel = functools.partial(
        _conv_bn_tanh_kernel, tl=TL, tle=TLE, kernel_size=K, dilation=dilation)
    out = pl.pallas_call(
        fused_kernel,
        grid=(N, NJ),
        in_specs=[
            pl.BlockSpec((1, C_in, L_in), lambda n, j: (n, 0, 0)),
            pl.BlockSpec((K, C_out, C_in), lambda n, j: (0, 0, 0)),
            pl.BlockSpec((C_out, 1), lambda n, j: (0, 0)),
            pl.BlockSpec((C_out, 1), lambda n, j: (0, 0)),
        ],
        out_specs=pl.BlockSpec((1, C_out, TL), lambda n, j: (n, 0, j)),
        out_shape=jax.ShapeDtypeStruct((N, C_out, NJ * TL), jnp.float32),
        compiler_params=pltpu.CompilerParams(
            dimension_semantics=("parallel", "parallel"),
            vmem_limit_bytes=vmem_limit),
    )(x_pad, w_t, scale, shift)

    return out if NJ * TL == L_out else out[:, :, :L_out]


def reference(x, w, b, gamma, beta, *, kernel_size=3, dilation=1, padding=True):
    """Pure-JAX (f32) replica of Conv.forward (train-mode BN, biased variance)."""
    p = (kernel_size - 1) // 2 if padding else 0
    y = lax.conv_general_dilated(x, w, window_strides=(1,), padding=((p, p),),
                                 rhs_dilation=(dilation,),
                                 dimension_numbers=('NCH', 'OIH', 'NCH'))
    y = y + b[None, :, None]
    mean = jnp.mean(y, axis=(0, 2), keepdims=True)
    var = jnp.mean((y - mean) ** 2, axis=(0, 2), keepdims=True)
    yn = (y - mean) * lax.rsqrt(var + EPS)
    return jnp.tanh(yn * gamma[None, :, None] + beta[None, :, None])


if __name__ == "__main__":
    def make(case_key, N, C_in, C_out, L, K):
        ks = jax.random.split(case_key, 5)
        x = jax.random.normal(ks[0], (N, C_in, L), jnp.float32)
        w = 0.2 * jax.random.normal(ks[1], (C_out, C_in, K), jnp.float32)
        b = 0.1 * jax.random.normal(ks[2], (C_out,), jnp.float32)
        gamma = 1.0 + 0.1 * jax.random.normal(ks[3], (C_out,), jnp.float32)
        beta = 0.1 * jax.random.normal(ks[4], (C_out,), jnp.float32)
        return x, w, b, gamma, beta

    # Case 1: small shape, f32 compute path, tight tolerance.
    N, C_in, C_out, L, K = 2, 4, 8, 16, 3
    x, w, b, gamma, beta = make(jax.random.PRNGKey(0), N, C_in, C_out, L, K)
    out = jax.block_until_ready(
        conv_bn_tanh(x, w, b, gamma, beta, kernel_size=K, dilation=1,
                     padding=True, compute_dtype=jnp.float32))
    ref = jax.block_until_ready(
        reference(x, w, b, gamma, beta, kernel_size=K, dilation=1, padding=True))
    assert out.shape == ref.shape == (N, C_out, L), out.shape
    err = float(jnp.max(jnp.abs(out - ref)))
    assert jnp.allclose(out, ref, atol=1e-4, rtol=1e-4), err

    # Case 2: multi-tile + core-split + dilation, bf16 inputs (f32 accumulation).
    # Looser tolerance reflects bf16 input rounding only.
    N2, L2, K2, d2 = 2, 4500, 3, 2
    x2, w2, b2, g2, be2 = make(jax.random.PRNGKey(1), N2, C_in, C_out, L2, K2)
    out2 = jax.block_until_ready(
        conv_bn_tanh(x2, w2, b2, g2, be2, kernel_size=K2, dilation=d2,
                     padding=True, compute_dtype=jnp.bfloat16))
    ref2 = jax.block_until_ready(
        reference(x2, w2, b2, g2, be2, kernel_size=K2, dilation=d2,
                  padding=True))
    assert out2.shape == ref2.shape, (out2.shape, ref2.shape)
    err2 = float(jnp.max(jnp.abs(out2 - ref2)))
    assert jnp.allclose(out2, ref2, atol=3e-2, rtol=3e-2), err2

    print("KERNEL_OK")
</pallas_src>

<mosaic_0001>
module attributes {stable_mosaic.version = 11 : i64} {
  func.func @_stats_kernel(%arg0: i32, %arg1: i32, %arg2: i32, %arg3: memref<1x4x256xf32, #tpu.memory_space<vmem>>, %arg4: memref<3x8x4xf32, #tpu.memory_space<vmem>>, %arg5: memref<1x8x1xf32, #tpu.memory_space<vmem>>, %arg6: memref<1x8x1xf32, #tpu.memory_space<vmem>>) attributes {dimension_semantics = [#tpu.dimension_semantics<parallel>, #tpu.dimension_semantics<parallel>, #tpu.dimension_semantics<arbitrary>], iteration_bounds = array<i64: 1, 2, 1>, scalar_prefetch = 0 : i64, scratch_operands = 0 : i64, tpu.core_type = #tpu.core_type<tc>, window_params = [{transform_indices = @transform_0, window_bounds = array<i64: 1, 4, 256>}, {pipeline_mode = #tpu.pipeline_mode<synchronous>, transform_indices = @transform_1, window_bounds = array<i64: 3, 8, 4>}, {transform_indices = @transform_2, window_bounds = array<i64: 1, 8, 1>}, {transform_indices = @transform_3, window_bounds = array<i64: 1, 8, 1>}]} {
    %c1_i32 = arith.constant 1 : i32
    %0 = arith.muli %arg0, %c1_i32 : i32
    %1 = arith.addi %0, %arg2 : i32
    %c128_i32 = arith.constant 128 : i32
    %2 = arith.muli %1, %c128_i32 : i32
    %3 = tpu.assume_multiple %2, 128 : i32
    %c0 = arith.constant 0 : index
    %c0_0 = arith.constant 0 : index
    %4 = arith.index_cast %3 : i32 to index
    %5 = vector.load %arg3[%c0, %c0_0, %4] : memref<1x4x256xf32, #tpu.memory_space<vmem>>, vector<1x4x256xf32>
    %6 = vector.shape_cast %5 : vector<1x4x256xf32> to vector<4x256xf32>
    %cst = arith.constant 0.000000e+00 : f32
    %7 = vector.broadcast %cst : f32 to vector<8x128xf32>
    %8 = vector.extract_strided_slice %6 {offsets = [0, 0], sizes = [4, 128], strides = [1, 1]} : vector<4x256xf32> to vector<4x128xf32>
    %c0_1 = arith.constant 0 : index
    %c0_2 = arith.constant 0 : index
    %c0_3 = arith.constant 0 : index
    %9 = vector.load %arg4[%c0_1, %c0_2, %c0_3] : memref<3x8x4xf32, #tpu.memory_space<vmem>>, vector<1x8x4xf32>
    %10 = vector.shape_cast %9 : vector<1x8x4xf32> to vector<8x4xf32>
    %cst_4 = arith.constant dense<0.000000e+00> : vector<8x128xf32>
    %11 = tpu.matmul %10, %8, %cst_4 {dimension_numbers = #tpu.dot_dimension_numbers<[1], [0], [0], [1], [0, 0, 1, 1], [], []>} : vector<8x4xf32>, vector<4x128xf32>, vector<8x128xf32> -> vector<8x128xf32>
    %12 = arith.addf %7, %11 : vector<8x128xf32>
    %13 = vector.extract_strided_slice %6 {offsets = [0, 1], sizes = [4, 128], strides = [1, 1]} : vector<4x256xf32> to vector<4x128xf32>
    %c1 = arith.constant 1 : index
    %c0_5 = arith.constant 0 : index
    %c0_6 = arith.constant 0 : index
    %14 = vector.load %arg4[%c1, %c0_5, %c0_6] : memref<3x8x4xf32, #tpu.memory_space<vmem>>, vector<1x8x4xf32>
    %15 = vector.shape_cast %14 : vector<1x8x4xf32> to vector<8x4xf32>
    %cst_7 = arith.constant dense<0.000000e+00> : vector<8x128xf32>
    %16 = tpu.matmul %15, %13, %cst_7 {dimension_numbers = #tpu.dot_dimension_numbers<[1], [0], [0], [1], [0, 0, 1, 1], [], []>} : vector<8x4xf32>, vector<4x128xf32>, vector<8x128xf32> -> vector<8x128xf32>
    %17 = arith.addf %12, %16 : vector<8x128xf32>
    %18 = vector.extract_strided_slice %6 {offsets = [0, 2], sizes = [4, 128], strides = [1, 1]} : vector<4x256xf32> to vector<4x128xf32>
    %c2 = arith.constant 2 : index
    %c0_8 = arith.constant 0 : index
    %c0_9 = arith.constant 0 : index
    %19 = vector.load %arg4[%c2, %c0_8, %c0_9] : memref<3x8x4xf32, #tpu.memory_space<vmem>>, vector<1x8x4xf32>
    %20 = vector.shape_cast %19 : vector<1x8x4xf32> to vector<8x4xf32>
    %cst_10 = arith.constant dense<0.000000e+00> : vector<8x128xf32>
    %21 = tpu.matmul %20, %18, %cst_10 {dimension_numbers = #tpu.dot_dimension_numbers<[1], [0], [0], [1], [0, 0, 1, 1], [], []>} : vector<8x4xf32>, vector<4x128xf32>, vector<8x128xf32> -> vector<8x128xf32>
    %22 = arith.addf %17, %21 : vector<8x128xf32>
    %23 = tpu.iota {dimensions = array<i32: 1>} : vector<1x128xi32>
    %24 = vector.broadcast %3 : i32 to vector<1x128xi32>
    %25 = arith.addi %24, %23 : vector<1x128xi32>
    %c16_i32 = arith.constant 16 : i32
    %26 = vector.broadcast %c16_i32 : i32 to vector<1x128xi32>
    %27 = arith.cmpi slt, %25, %26 : vector<1x128xi32>
    %28 = arith.extui %27 : vector<1x128xi1> to vector<1x128xi32>
    %29 = arith.sitofp %28 : vector<1x128xi32> to vector<1x128xf32>
    %30 = vector.broadcast %29 : vector<1x128xf32> to vector<8x128xf32>
    %31 = arith.mulf %22, %30 : vector<8x128xf32>
    %c0_i32 = arith.constant 0 : i32
    %32 = arith.cmpi eq, %arg2, %c0_i32 : i32
    %33 = arith.extui %32 : i1 to i32
    %c0_i32_11 = arith.constant 0 : i32
    %34 = arith.cmpi ne, %33, %c0_i32_11 : i32
    scf.if %34 {
      %cst_26 = arith.constant 0.000000e+00 : f32
      %52 = vector.broadcast %cst_26 : f32 to vector<1x8x1xf32>
      %c0_27 = arith.constant 0 : index
      %c0_28 = arith.constant 0 : index
      %c0_29 = arith.constant 0 : index
      %53 = vector.load %arg5[%c0_27, %c0_28, %c0_29] : memref<1x8x1xf32, #tpu.memory_space<vmem>>, vector<1x8x1xf32>
      tpu.vector_store %arg5[%c0_27, %c0_28, %c0_29], %52 {strides = array<i32>} : memref<1x8x1xf32, #tpu.memory_space<vmem>>, vector<1x8x1xf32>,
      %cst_30 = arith.constant 0.000000e+00 : f32
      %54 = vector.broadcast %cst_30 : f32 to vector<1x8x1xf32>
      %c0_31 = arith.constant 0 : index
      %c0_32 = arith.constant 0 : index
      %c0_33 = arith.constant 0 : index
      %55 = vector.load %arg6[%c0_31, %c0_32, %c0_33] : memref<1x8x1xf32, #tpu.memory_space<vmem>>, vector<1x8x1xf32>
      tpu.vector_store %arg6[%c0_31, %c0_32, %c0_33], %54 {strides = array<i32>} : memref<1x8x1xf32, #tpu.memory_space<vmem>>, vector<1x8x1xf32>,
    } else {
    }
    %c0_12 = arith.constant 0 : index
    %c0_13 = arith.constant 0 : index
    %c0_14 = arith.constant 0 : index
    %35 = vector.load %arg5[%c0_12, %c0_13, %c0_14] : memref<1x8x1xf32, #tpu.memory_space<vmem>>, vector<1x8x1xf32>
    %36 = vector.shape_cast %35 : vector<1x8x1xf32> to vector<8x1xf32>
    %cst_15 = arith.constant dense<0.000000e+00> : vector<8xf32>
    %37 = vector.multi_reduction <add>, %31, %cst_15 [1] : vector<8x128xf32> to vector<8xf32>
    %38 = vector.shape_cast %37 : vector<8xf32> to vector<8x1xf32>
    %39 = arith.addf %36, %38 : vector<8x1xf32>
    %c0_16 = arith.constant 0 : index
    %c0_17 = arith.constant 0 : index
    %c0_18 = arith.constant 0 : index
    %40 = vector.load %arg5[%c0_16, %c0_17, %c0_18] : memref<1x8x1xf32, #tpu.memory_space<vmem>>, vector<1x8x1xf32>
    %41 = vector.shape_cast %40 : vector<1x8x1xf32> to vector<8x1xf32>
    %42 = vector.shape_cast %39 : vector<8x1xf32> to vector<1x8x1xf32>
    tpu.vector_store %arg5[%c0_16, %c0_17, %c0_18], %42 {strides = array<i32>} : memref<1x8x1xf32, #tpu.memory_space<vmem>>, vector<1x8x1xf32>,
    %c0_19 = arith.constant 0 : index
    %c0_20 = arith.constant 0 : index
    %c0_21 = arith.constant 0 : index
    %43 = vector.load %arg6[%c0_19, %c0_20, %c0_21] : memref<1x8x1xf32, #tpu.memory_space<vmem>>, vector<1x8x1xf32>
    %44 = vector.shape_cast %43 : vector<1x8x1xf32> to vector<8x1xf32>
    %45 = arith.mulf %31, %31 : vector<8x128xf32>
    %cst_22 = arith.constant dense<0.000000e+00> : vector<8xf32>
    %46 = vector.multi_reduction <add>, %45, %cst_22 [1] : vector<8x128xf32> to vector<8xf32>
    %47 = vector.shape_cast %46 : vector<8xf32> to vector<8x1xf32>
    %48 = arith.addf %44, %47 : vector<8x1xf32>
    %c0_23 = arith.constant 0 : index
    %c0_24 = arith.constant 0 : index
    %c0_25 = arith.constant 0 : index
    %49 = vector.load %arg6[%c0_23, %c0_24, %c0_25] : memref<1x8x1xf32, #tpu.memory_space<vmem>>, vector<1x8x1xf32>
    %50 = vector.shape_cast %49 : vector<1x8x1xf32> to vector<8x1xf32>
    %51 = vector.shape_cast %48 : vector<8x1xf32> to vector<1x8x1xf32>
    tpu.vector_store %arg6[%c0_23, %c0_24, %c0_25], %51 {strides = array<i32>} : memref<1x8x1xf32, #tpu.memory_space<vmem>>, vector<1x8x1xf32>,
    return
  }
  func.func @transform_0(%arg0: i32, %arg1: i32, %arg2: i32) -> (i32, i32, i32) {
    %c0_i32 = arith.constant 0 : i32
    %c0_i32_0 = arith.constant 0 : i32
    %c0_i32_1 = arith.constant 0 : i32
    return %arg1, %c0_i32, %c0_i32_0 : i32, i32, i32
  }
  func.func @transform_1(%arg0: i32, %arg1: i32, %arg2: i32) -> (i32, i32, i32) {
    %c0_i32 = arith.constant 0 : i32
    %c0_i32_0 = arith.constant 0 : i32
    %c0_i32_1 = arith.constant 0 : i32
    %c0_i32_2 = arith.constant 0 : i32
    return %c0_i32, %c0_i32_0, %c0_i32_1 : i32, i32, i32
  }
  func.func @transform_2(%arg0: i32, %arg1: i32, %arg2: i32) -> (i32, i32, i32) {
    %c2_i32 = arith.constant 2 : i32
    %0 = arith.muli %arg0, %c2_i32 : i32
    %1 = arith.addi %0, %arg1 : i32
    %c0_i32 = arith.constant 0 : i32
    %c0_i32_0 = arith.constant 0 : i32
    %c0_i32_1 = arith.constant 0 : i32
    return %1, %c0_i32, %c0_i32_0 : i32, i32, i32
  }
  func.func @transform_3(%arg0: i32, %arg1: i32, %arg2: i32) -> (i32, i32, i32) {
    %c2_i32 = arith.constant 2 : i32
    %0 = arith.muli %arg0, %c2_i32 : i32
    %1 = arith.addi %0, %arg1 : i32
    %c0_i32 = arith.constant 0 : i32
    %c0_i32_0 = arith.constant 0 : i32
    %c0_i32_1 = arith.constant 0 : i32
    return %1, %c0_i32, %c0_i32_0 : i32, i32, i32
  }
}

</mosaic_0001>

<bundles_post_ra>
// kernel: tpu_custom_call.1
= control target key start
LH: loop header
LB: loop body
LE: loop exit
PB: predicated region body
PF: predicated region fallthrough
CT: control target
= control target key end

     0   :  { %s732_s12 = smov 0   ;;  %s734_s13 = smov 0   ;;  %s795_s0 = inlined_call_operand.vmem [shape: f32[2,4,256], index: 0, kind: input, shape index: {}]   ;;  %s796_s1 = inlined_call_operand.vmem [shape: f32[3,8,4], index: 1, kind: input, shape index: {}]   ;;  %s797_s2 = inlined_call_operand.vmem [shape: f32[2,8,1], index: 2, kind: output, shape index: {0}]   ;;  %s798_s3 = inlined_call_operand.vmem [shape: f32[2,8,1], index: 3, kind: output, shape index: {1}]  }
   0x1   :  { %s736_s14 = smov 0  }
   0x2 LB: > { %s29_s15 = sadd.s32 1, %s702_s13  ;;  %p614_p0 = scmp.ge.s32.totalorder %s706_s14, 1  ;;  %s706_s14 = sphi %s736_s14, %s14_s14   ;;  %s702_s13 = sphi %s734_s13, %s800_s13   ;;  %s698_s12 = sphi %s732_s12, %s799_s12  }
   0x3   : > { %p31_p1 = scmp.ge.s32.totalorder %s29_s15, 2  ;;  %p167_p2 = scmp.lt.s32.totalorder %s706_s14, 3 }
   0x5   : > { %s802_s15 = smov (%p31_p1, %s29_s15), 0  ;;  %p168_p3 = pnand %p614_p0, %p167_p2 }
   0x6   : > { %p198_p4 = scmp.lt.s32.totalorder (!%p168_p3), %s698_s12, 1  ;;  %v708_v0 = vmov (!%p168_p3), 0.0   ;;  %vm709_vm0 = vmmov (!%p168_p3), 0   ;;  %vm241_vm1 = vcmask (!%p168_p3), 1043456   ;;  %v226_v2 = vld [vmem:[%s796_s1] sm:$0xff] (!%p168_p3)  ;;  %vm237_vm2 = vcmask (!%p168_p3), 31744  }
   0x7   : > { %171 = sbr.rel (%p168_p3) target bundleno = 502 (0x1f6), region = 28  ;;  %642 = vmatprep.subr.mxu0 (!%p168_p3), %v708_v0  ;;  %644 = vmatprep.mubr.msk.f32.mxu0 (!%p168_p3), %vm709_vm0, %v708_v0  ;;  %s710_s22 = smov (!%p168_p3), 126   ;;  %vm395_vm3 = vcmask (!%p168_p3), 1031168   ;;  %vm235_vm4 = vcmask (!%p168_p3), 1039360   ;;  %v619_v8 = vld [vmem:[%s796_s1 + $0x8] sm:$0xff] (!%p168_p3)  ;;  %v624_v9 = vld [vmem:[%s796_s1 + $0x10] sm:$0xff] (!%p168_p3)  ;;  %v473_v12 = vlaneseq (!%p168_p3) }
   0x8   : > { %637 = vmatprep.subr.mxu1 (!%p168_p3), %v708_v0  ;;  %639 = vmatprep.mubr.msk.f32.mxu1 (!%p168_p3), %vm709_vm0, %v708_v0  ;;  %s711_s23 = smov (!%p168_p3), 127   ;;  %vm485_vm5 = vcmask (!%p168_p3), 7168  }
   0x9   : > { %v474_v13 = vand.u32 (!%p168_p3), 127, %v473_v12 }
   0xb   : > { %vm477_vm6 = vcmp.lt.s32.totalorder (!%p168_p3), %v474_v13, 16 }
   0xc   : > { %v627_v16 = vsel (!%p168_p3), %vm477_vm6, 1.0, %v708_v0 }
   0xe   : > { %s804_s12 = smov (!%p198_p4, %s698_s12), 1 }
   0xf   : > { %s752_s16 = sshll.u32 %s804_s12, 3 }
  0x10   : > { %s202_s19 = scalar_lea.vmem %s795_s0, %s752_s16  ;;  %s208_s30 = scalar_lea.vmem %s797_s2, %s752_s16 }
  0x11   : > { %v225_v1 = vld [vmem:[%s202_s19] sm:$0xff]  ;;  %486 = vst.msk [vmem:[%s208_s30] sm:$0xff] %vm485_vm5, %v708_v0  ;;  %s216_s6 = scalar_lea.vmem %s798_s3, %s752_s16 }
  0x12   : > { %391 = vrot.lane.b32.xlu1 %v225_v1, %s710_s22  ;;  %231 = vrot.lane.b32.xlu0 %v225_v1, %s711_s23  ;;  %v230_v3 = vcombine.high %v225_v1, %v225_v1  ;;  %487 = vst.msk [vmem:[%s216_s6] sm:$0xff] %vm485_vm5, %v708_v0 }
  0x13   : > { %643 = vmatpush3.msk.msra.mxu0 %vm241_vm1, %v225_v1 }
  0x14   : > { %645 = vmatmul.mubr.msk.f32.vlgmr.msra.gmra.mrb[0].mxu0 %vm237_vm2, %v226_v2  ;;  %647 = vmatprep.subr.mxu0 %v708_v0 }
  0x15   : > { %649 = vmatprep.mubr.msk.f32.mxu0 %vm709_vm0, %v708_v0 }
  0x16   : > { %393 = vrot.lane.b32.xlu1 %v230_v3, %s710_s22  ;;  %233 = vrot.lane.b32.xlu0 %v230_v3, %s711_s23 }
  0x18   : > { %v488_v22 = vld [vmem:[%s208_s30] sm:$0xff] }
  0x19   : > { %v494_v24 = vld [vmem:[%s216_s6] sm:$0xff] }
  0x84   : > { %v392_v4 = vpop.permute.xlu1 %391  ;;  %v232_v5 = vpop.permute.xlu0 %231 }
  0x88   : > { %v394_v6 = vpop.permute.xlu1 %393  ;;  %v234_v7 = vpop.permute.xlu0 %233 }
  0x89   : > { %v396_v10 = vsel %vm395_vm3, %v392_v4, %v394_v6  ;;  %v236_v11 = vsel %vm235_vm4, %v232_v5, %v234_v7 }
  0x8a   : > { %638 = vmatpush3.msk.msra.mxu1 %vm241_vm1, %v236_v11  ;;  %648 = vmatpush3.msk.msra.mxu0 %vm241_vm1, %v396_v10 }
  0x8b   : > { %640 = vmatmul.mubr.msk.f32.vlgmr.msra.gmra.mrb[0].mxu1 %vm237_vm2, %v619_v8  ;;  %650 = vmatmul.mubr.msk.f32.vlgmr.msra.gmra.mrb[0].mxu0 %vm237_vm2, %v624_v9 }
 0x15e   : > { %v310_v14 = vpop.f32.mrb[0].mxu1  ;;  %v468_v15 = vpop.f32.mrb[0].mxu0 }
 0x15f   : > { %v652_v17 = vadd.f32 %v468_v15, %v310_v14  ;;  %v651_v18 = vpop.f32.mrb[1].mxu0  ;;  %v641_v19 = vpop.f32.mrb[1].mxu1 }
 0x161   : > { %v480_v20 = vmul.f32 %v652_v17, %v627_v16 }
 0x163   : > { %489 = vadd.xlane.f32.xlu0 %v480_v20  ;;  %v495_v21 = vmul.f32 %v480_v20, %v480_v20 }
 0x165   : > { %496 = vadd.xlane.f32.xlu1 %v495_v21 }
 0x1f0   : > { %v490_v23 = vpop.xlane.xlu0 %489 }
 0x1f1   : > { %v491_v25 = vadd.f32 %v490_v23, %v488_v22 }
 0x1f2   : > { %v497_v26 = vpop.xlane.xlu1 %496 }
 0x1f3   : > { %493 = vst.msk [vmem:[%s208_s30] sm:$0xff] %vm485_vm5, %v491_v25  ;;  %v498_v27 = vadd.f32 %v497_v26, %v494_v24 }
 0x1f5   : > { %499 = vst.msk [vmem:[%s216_s6] sm:$0xff] %vm485_vm5, %v498_v27 }
 0x1f6 PF: > { %s14_s14 = sadd.s32 1, %s706_s14   ;;  %s799_s12 = smov %s702_s13 }
 0x1f7   : > { %p11_p5 = scmp.ge.s32.totalorder %s14_s14, 4   ;;  %s800_s13 = smov %s802_s15 }
 0x1f9   :  { %13 = sbr.rel (!%p11_p5) target bundleno = 2 (0x2), region = 77 }

</bundles_post_ra>
